<compile_context>
chip_gen: v5e
topology: v5e:2x2
jax: 0.10.0
libtpu: 0.0.40
codegen_flags: <defaults>
</compile_context>

<pallas_src>
import jax
import jax.numpy as jnp
from jax.experimental import pallas as pl
from jax.experimental.pallas import tpu as pltpu


# ----------------------------- Pallas kernel ------------------------------ #
def _encoder_kernel(a_ref, x_ref, wl1_ref, wr1_ref, b1_ref,
                    wl2_ref, wr2_ref, b2_ref, o_ref):
    """Fused two-layer SAGE encoder.

    a:   [NP, NP]  row-normalized (mean) adjacency, zero-padded
    x:   [NP, CP]  node features, zero-padded
    wl1: [CP, HP]  neighbor-branch weight, layer 1
    wr1: [CP, HP]  root-branch weight,     layer 1
    b1:  [1, HP]
    wl2: [HP, OP]  neighbor-branch weight, layer 2
    wr2: [HP, OP]  root-branch weight,     layer 2
    b2:  [1, OP]
    o:   [NP, OP]
    """
    a = a_ref[...]
    x = x_ref[...]

    # ---- layer 1: h = relu( (A@x) @ Wl1 + x @ Wr1 + b1 ) ----
    agg1 = jnp.dot(a, x, preferred_element_type=jnp.float32)
    h = (jnp.dot(agg1, wl1_ref[...], preferred_element_type=jnp.float32)
         + jnp.dot(x, wr1_ref[...], preferred_element_type=jnp.float32)
         + b1_ref[...])
    h = jnp.maximum(h, 0.0)

    # ---- layer 2: out = (A@h) @ Wl2 + h @ Wr2 + b2 ----
    agg2 = jnp.dot(a, h, preferred_element_type=jnp.float32)
    out = (jnp.dot(agg2, wl2_ref[...], preferred_element_type=jnp.float32)
           + jnp.dot(h, wr2_ref[...], preferred_element_type=jnp.float32)
           + b2_ref[...])

    o_ref[...] = out.astype(o_ref.dtype)


# ------------------------------- glue (JAX) -------------------------------- #
def _round_up(n, m):
    return ((n + m - 1) // m) * m


def _pad2(x, rows, cols):
    return jnp.pad(x, ((0, rows - x.shape[0]), (0, cols - x.shape[1])))


def build_mean_adjacency(edge_index, num_nodes):
    """Row-normalized adjacency so (A @ X)[i] = mean of x_j over edges j->i.

    edge_index[0] = source nodes, edge_index[1] = target nodes
    (PyG flow='source_to_target'). Isolated targets aggregate to 0.
    """
    src = edge_index[0]
    dst = edge_index[1]
    adj = jnp.zeros((num_nodes, num_nodes), jnp.float32).at[dst, src].add(1.0)
    deg = adj.sum(axis=1, keepdims=True)
    return adj / jnp.maximum(deg, 1.0)


def init_sage_params(key, c_in, c_out):
    """Deterministic synthetic init (glorot-ish scale)."""
    k1, k2, k3 = jax.random.split(key, 3)
    scale = 1.0 / jnp.sqrt(jnp.float32(c_in))
    w_l = jax.random.normal(k1, (c_in, c_out), jnp.float32) * scale  # neighbor branch
    w_r = jax.random.normal(k2, (c_in, c_out), jnp.float32) * scale  # root branch
    b_l = jax.random.normal(k3, (1, c_out), jnp.float32) * 0.1       # bias (neighbor lin)
    return w_l, w_r, b_l


def encoder_forward(params, x, edge_index):
    """Encoder: x = relu(SAGEConv1(x, ei)); x = SAGEConv2(x, ei). One kernel."""
    (w_l1, w_r1, b_l1), (w_l2, w_r2, b_l2) = params
    n, c_in = x.shape
    hid = w_l1.shape[1]
    c_out = w_l2.shape[1]

    # lane-dense padded sizes (multiples of 128 on every matmul dim)
    npad = max(_round_up(n, 128), 128)
    cp = max(_round_up(c_in, 128), 128)
    hp = max(_round_up(hid, 128), 128)
    op = max(_round_up(c_out, 128), 128)

    a = build_mean_adjacency(edge_index, n)
    a_pad = _pad2(a, npad, npad)
    x_pad = _pad2(x, npad, cp)

    wl1 = _pad2(w_l1, cp, hp)
    wr1 = _pad2(w_r1, cp, hp)
    b1 = _pad2(b_l1, 1, hp)
    wl2 = _pad2(w_l2, hp, op)
    wr2 = _pad2(w_r2, hp, op)
    b2 = _pad2(b_l2, 1, op)

    vmem = pl.BlockSpec(memory_space=pltpu.MemorySpace.VMEM)
    out_pad = pl.pallas_call(
        _encoder_kernel,
        out_shape=jax.ShapeDtypeStruct((npad, op), jnp.float32),
        in_specs=[vmem] * 8,
        out_specs=vmem,
        compiler_params=pltpu.CompilerParams(vmem_limit_bytes=64 * 1024 * 1024),
    )(a_pad, x_pad, wl1, wr1, b1, wl2, wr2, b2)

    return out_pad[:n, :c_out]


def encoder_reference(params, x, edge_index):
    """Pure-JAX reference for correctness checking."""
    (w_l1, w_r1, b_l1), (w_l2, w_r2, b_l2) = params
    a = build_mean_adjacency(edge_index, x.shape[0])

    def sage(a, x, wl, wr, bl):
        return (a @ x) @ wl + x @ wr + bl

    h = jnp.maximum(sage(a, x, w_l1, w_r1, b_l1), 0.0)
    return sage(a, h, w_l2, w_r2, b_l2)


# ---------------------------------- main ----------------------------------- #
if __name__ == "__main__":
    key = jax.random.PRNGKey(0)
    k_x, k_e, k_p1, k_p2 = jax.random.split(key, 4)

    num_nodes = 16
    in_channels = 8
    out_channels = 8           # hidden = 2 * out_channels = 16
    num_edges = 32

    # node features [N, C_in]
    x = jax.random.normal(k_x, (num_nodes, in_channels), jnp.float32)

    # deterministic edge_index [2, E]: a ring plus random edges
    ring_src = jnp.arange(num_nodes, dtype=jnp.int32)
    ring_dst = (ring_src + 1) % num_nodes
    rand_src = jax.random.randint(k_e, (num_edges - num_nodes,), 0, num_nodes, jnp.int32)
    rand_dst = jax.random.randint(
        jax.random.fold_in(k_e, 1), (num_edges - num_nodes,), 0, num_nodes, jnp.int32
    )
    edge_index = jnp.stack(
        [jnp.concatenate([ring_src, rand_src]), jnp.concatenate([ring_dst, rand_dst])],
        axis=0,
    )

    params = (
        init_sage_params(k_p1, in_channels, 2 * out_channels),
        init_sage_params(k_p2, 2 * out_channels, out_channels),
    )

    fwd = jax.jit(encoder_forward)
    out = jax.block_until_ready(fwd(params, x, edge_index))

    ref = encoder_reference(params, x, edge_index)
    assert out.shape == (num_nodes, out_channels)
    assert jnp.allclose(out, ref, atol=1e-4, rtol=1e-4), "Pallas output mismatch vs reference"

    print("KERNEL_OK")
</pallas_src>

<mosaic_0001>
module attributes {stable_mosaic.version = 11 : i64} {
  func.func @_encoder_kernel(%arg0: memref<128x128xf32, #tpu.memory_space<vmem>>, %arg1: memref<128x128xf32, #tpu.memory_space<vmem>>, %arg2: memref<128x128xf32, #tpu.memory_space<vmem>>, %arg3: memref<128x128xf32, #tpu.memory_space<vmem>>, %arg4: memref<1x128xf32, #tpu.memory_space<vmem>>, %arg5: memref<128x128xf32, #tpu.memory_space<vmem>>, %arg6: memref<128x128xf32, #tpu.memory_space<vmem>>, %arg7: memref<1x128xf32, #tpu.memory_space<vmem>>, %arg8: memref<128x128xf32, #tpu.memory_space<vmem>>) attributes {dimension_semantics = [], scalar_prefetch = 0 : i64, scratch_operands = 0 : i64, tpu.core_type = #tpu.core_type<tc>} {
    %c0 = arith.constant 0 : index
    %c0_0 = arith.constant 0 : index
    %0 = vector.load %arg0[%c0, %c0_0] : memref<128x128xf32, #tpu.memory_space<vmem>>, vector<128x128xf32>
    %c0_1 = arith.constant 0 : index
    %c0_2 = arith.constant 0 : index
    %1 = vector.load %arg1[%c0_1, %c0_2] : memref<128x128xf32, #tpu.memory_space<vmem>>, vector<128x128xf32>
    %cst = arith.constant dense<0.000000e+00> : vector<128x128xf32>
    %2 = tpu.matmul %0, %1, %cst {dimension_numbers = #tpu.dot_dimension_numbers<[1], [0], [0], [1], [0, 0, 1, 1], [], []>} : vector<128x128xf32>, vector<128x128xf32>, vector<128x128xf32> -> vector<128x128xf32>
    %c0_3 = arith.constant 0 : index
    %c0_4 = arith.constant 0 : index
    %3 = vector.load %arg2[%c0_3, %c0_4] : memref<128x128xf32, #tpu.memory_space<vmem>>, vector<128x128xf32>
    %cst_5 = arith.constant dense<0.000000e+00> : vector<128x128xf32>
    %4 = tpu.matmul %2, %3, %cst_5 {dimension_numbers = #tpu.dot_dimension_numbers<[1], [0], [0], [1], [0, 0, 1, 1], [], []>} : vector<128x128xf32>, vector<128x128xf32>, vector<128x128xf32> -> vector<128x128xf32>
    %c0_6 = arith.constant 0 : index
    %c0_7 = arith.constant 0 : index
    %5 = vector.load %arg3[%c0_6, %c0_7] : memref<128x128xf32, #tpu.memory_space<vmem>>, vector<128x128xf32>
    %cst_8 = arith.constant dense<0.000000e+00> : vector<128x128xf32>
    %6 = tpu.matmul %1, %5, %cst_8 {dimension_numbers = #tpu.dot_dimension_numbers<[1], [0], [0], [1], [0, 0, 1, 1], [], []>} : vector<128x128xf32>, vector<128x128xf32>, vector<128x128xf32> -> vector<128x128xf32>
    %7 = arith.addf %4, %6 : vector<128x128xf32>
    %c0_9 = arith.constant 0 : index
    %c0_10 = arith.constant 0 : index
    %8 = vector.load %arg4[%c0_9, %c0_10] : memref<1x128xf32, #tpu.memory_space<vmem>>, vector<1x128xf32>
    %9 = vector.broadcast %8 : vector<1x128xf32> to vector<128x128xf32>
    %10 = arith.addf %7, %9 : vector<128x128xf32>
    %cst_11 = arith.constant 0.000000e+00 : f32
    %11 = vector.broadcast %cst_11 : f32 to vector<128x128xf32>
    %12 = arith.maximumf %10, %11 : vector<128x128xf32>
    %cst_12 = arith.constant dense<0.000000e+00> : vector<128x128xf32>
    %13 = tpu.matmul %0, %12, %cst_12 {dimension_numbers = #tpu.dot_dimension_numbers<[1], [0], [0], [1], [0, 0, 1, 1], [], []>} : vector<128x128xf32>, vector<128x128xf32>, vector<128x128xf32> -> vector<128x128xf32>
    %c0_13 = arith.constant 0 : index
    %c0_14 = arith.constant 0 : index
    %14 = vector.load %arg5[%c0_13, %c0_14] : memref<128x128xf32, #tpu.memory_space<vmem>>, vector<128x128xf32>
    %cst_15 = arith.constant dense<0.000000e+00> : vector<128x128xf32>
    %15 = tpu.matmul %13, %14, %cst_15 {dimension_numbers = #tpu.dot_dimension_numbers<[1], [0], [0], [1], [0, 0, 1, 1], [], []>} : vector<128x128xf32>, vector<128x128xf32>, vector<128x128xf32> -> vector<128x128xf32>
    %c0_16 = arith.constant 0 : index
    %c0_17 = arith.constant 0 : index
    %16 = vector.load %arg6[%c0_16, %c0_17] : memref<128x128xf32, #tpu.memory_space<vmem>>, vector<128x128xf32>
    %cst_18 = arith.constant dense<0.000000e+00> : vector<128x128xf32>
    %17 = tpu.matmul %12, %16, %cst_18 {dimension_numbers = #tpu.dot_dimension_numbers<[1], [0], [0], [1], [0, 0, 1, 1], [], []>} : vector<128x128xf32>, vector<128x128xf32>, vector<128x128xf32> -> vector<128x128xf32>
    %18 = arith.addf %15, %17 : vector<128x128xf32>
    %c0_19 = arith.constant 0 : index
    %c0_20 = arith.constant 0 : index
    %19 = vector.load %arg7[%c0_19, %c0_20] : memref<1x128xf32, #tpu.memory_space<vmem>>, vector<1x128xf32>
    %20 = vector.broadcast %19 : vector<1x128xf32> to vector<128x128xf32>
    %21 = arith.addf %18, %20 : vector<128x128xf32>
    %c0_21 = arith.constant 0 : index
    %c0_22 = arith.constant 0 : index
    %22 = vector.load %arg8[%c0_21, %c0_22] : memref<128x128xf32, #tpu.memory_space<vmem>>, vector<128x128xf32>
    tpu.vector_store %arg8[%c0_21, %c0_22], %21 {strides = array<i32>} : memref<128x128xf32, #tpu.memory_space<vmem>>, vector<128x128xf32>,
    return
  }
}

</mosaic_0001>

<bundles_post_ra>
// kernel: encoder_forward.1
= control target key start
LH: loop header
LB: loop body
LE: loop exit
PB: predicated region body
PF: predicated region fallthrough
CT: control target
= control target key end

     0   :  { %s1241_s1 = inlined_call_operand.vmem [shape: f32[128,128], index: 1, kind: input, shape index: {}]   ;;  %s1242_s0 = inlined_call_operand.vmem [shape: f32[128,128], index: 0, kind: input, shape index: {}]   ;;  %s1243_s2 = inlined_call_operand.vmem [shape: f32[128,128], index: 2, kind: input, shape index: {}]   ;;  %s1244_s3 = inlined_call_operand.vmem [shape: f32[128,128], index: 3, kind: input, shape index: {}]   ;;  %s1245_s4 = inlined_call_operand.vmem [shape: f32[1,128], index: 4, kind: input, shape index: {}]   ;;  %s1246_s6 = inlined_call_operand.vmem [shape: f32[128,128], index: 6, kind: input, shape index: {}]   ;;  %s1247_s5 = inlined_call_operand.vmem [shape: f32[128,128], index: 5, kind: input, shape index: {}]   ;;  %s1248_s7 = inlined_call_operand.vmem [shape: f32[1,128], index: 7, kind: input, shape index: {}]   ;;  %s1249_s8 = inlined_call_operand.vmem [shape: f32[128,128], index: 8, kind: output, shape index: {}]  }
   0x1   :  { %v673_v0 = vld [vmem:[%s1241_s1 + $0x78] sm:$0xff]  ;;  %v678_v1 = vld [vmem:[%s1241_s1 + $0x70] sm:$0xff]  ;;  %v685_v2 = vld [vmem:[%s1241_s1 + $0x68] sm:$0xff] }
   0x2   :  { %61 = vmatpush.msra.mxu0 %v673_v0  ;;  %591 = vmatpush.msra.mxu2 %v673_v0  ;;  %v692_v3 = vld [vmem:[%s1241_s1 + $0x60] sm:$0xff]  ;;  %v699_v4 = vld [vmem:[%s1241_s1 + $0x58] sm:$0xff]  ;;  %v706_v5 = vld [vmem:[%s1241_s1 + $0x50] sm:$0xff] }
   0x3   :  { %v713_v6 = vld [vmem:[%s1241_s1 + $0x48] sm:$0xff]  ;;  %v720_v7 = vld [vmem:[%s1241_s1 + $0x40] sm:$0xff]  ;;  %v727_v8 = vld [vmem:[%s1241_s1 + $0x38] sm:$0xff] }
   0x4   :  { %62 = vmatpush.msra.mxu0 %v678_v1  ;;  %592 = vmatpush.msra.mxu2 %v678_v1  ;;  %v734_v9 = vld [vmem:[%s1241_s1 + $0x30] sm:$0xff]  ;;  %v741_v10 = vld [vmem:[%s1241_s1 + $0x28] sm:$0xff]  ;;  %v748_v11 = vld [vmem:[%s1241_s1 + $0x20] sm:$0xff] }
   0x5   :  { %v755_v12 = vld [vmem:[%s1241_s1 + $0x18] sm:$0xff]  ;;  %v762_v13 = vld [vmem:[%s1241_s1 + $0x10] sm:$0xff]  ;;  %v769_v14 = vld [vmem:[%s1241_s1 + $0x8] sm:$0xff] }
   0x6   :  { %63 = vmatpush.msra.mxu0 %v685_v2  ;;  %593 = vmatpush.msra.mxu2 %v685_v2  ;;  %v776_v15 = vld [vmem:[%s1241_s1] sm:$0xff]  ;;  %v791_v17 = vld [vmem:[%s1242_s0 + $0x8] sm:$0xff]  ;;  %v797_v18 = vld [vmem:[%s1242_s0 + $0x10] sm:$0xff] }
   0x7   :  { %v782_v16 = vld [vmem:[%s1242_s0] sm:$0xff]  ;;  %v803_v19 = vld [vmem:[%s1242_s0 + $0x18] sm:$0xff]  ;;  %v140_v22 = vld [vmem:[%s1243_s2 + $0x70] sm:$0xff] }
   0x8   :  { %64 = vmatpush.msra.mxu0 %v692_v3  ;;  %594 = vmatpush.msra.mxu2 %v692_v3  ;;  %v809_v20 = vld [vmem:[%s1242_s0 + $0x40] sm:$0xff]  ;;  %v141_v21 = vld [vmem:[%s1243_s2 + $0x78] sm:$0xff]  ;;  %v826_v24 = vld [vmem:[%s1242_s0 + $0x48] sm:$0xff] }
   0x9   :  { %v821_v23 = vld [vmem:[%s1242_s0 + $0x20] sm:$0xff]  ;;  %v139_v25 = vld [vmem:[%s1243_s2 + $0x68] sm:$0xff]  ;;  %v157_v26 = vld [vmem:[%s1244_s3 + $0x78] sm:$0xff] }
   0xa   :  { %65 = vmatpush.msra.mxu0 %v699_v4  ;;  %595 = vmatpush.msra.mxu2 %v699_v4  ;;  %v138_v27 = vld [vmem:[%s1243_s2 + $0x60] sm:$0xff]  ;;  %v156_v28 = vld [vmem:[%s1244_s3 + $0x70] sm:$0xff]  ;;  %v137_v29 = vld [vmem:[%s1243_s2 + $0x58] sm:$0xff] }
   0xb   :  { %158 = vmatpush.msra.mxu1 %v157_v26  ;;  %v155_v30 = vld [vmem:[%s1244_s3 + $0x68] sm:$0xff]  ;;  %607 = vmatpush.msra.mxu3 %v157_v26  ;;  %v136_v32 = vld [vmem:[%s1243_s2 + $0x50] sm:$0xff]  ;;  %v154_v34 = vld [vmem:[%s1244_s3 + $0x60] sm:$0xff] }
   0xc   :  { %66 = vmatpush.msra.mxu0 %v706_v5  ;;  %596 = vmatpush.msra.mxu2 %v706_v5  ;;  %v851_v31 = vld [vmem:[%s1242_s0 + $0x28] sm:$0xff]  ;;  %v859_v33 = vld [vmem:[%s1242_s0 + $0x50] sm:$0xff]  ;;  %v153_v36 = vld [vmem:[%s1244_s3 + $0x58] sm:$0xff] }
   0xd   :  { %159 = vmatpush.msra.mxu1 %v156_v28  ;;  %608 = vmatpush.msra.mxu3 %v156_v28  ;;  %v135_v35 = vld [vmem:[%s1243_s2 + $0x48] sm:$0xff]  ;;  %v134_v37 = vld [vmem:[%s1243_s2 + $0x40] sm:$0xff]  ;;  %v152_v38 = vld [vmem:[%s1244_s3 + $0x50] sm:$0xff] }
   0xe   :  { %67 = vmatpush.msra.mxu0 %v713_v6  ;;  %597 = vmatpush.msra.mxu2 %v713_v6  ;;  %v133_v39 = vld [vmem:[%s1243_s2 + $0x38] sm:$0xff]  ;;  %v884_v40 = vld [vmem:[%s1242_s0 + $0x30] sm:$0xff]  ;;  %v151_v41 = vld [vmem:[%s1244_s3 + $0x48] sm:$0xff] }
   0xf   :  { %160 = vmatpush.msra.mxu1 %v155_v30  ;;  %609 = vmatpush.msra.mxu3 %v155_v30  ;;  %v892_v42 = vld [vmem:[%s1242_s0 + $0x58] sm:$0xff]  ;;  %v132_v43 = vld [vmem:[%s1243_s2 + $0x30] sm:$0xff]  ;;  %v150_v44 = vld [vmem:[%s1244_s3 + $0x40] sm:$0xff] }
  0x10   :  { %68 = vmatpush.msra.mxu0 %v720_v7  ;;  %598 = vmatpush.msra.mxu2 %v720_v7  ;;  %v131_v45 = vld [vmem:[%s1243_s2 + $0x28] sm:$0xff]  ;;  %v149_v46 = vld [vmem:[%s1244_s3 + $0x38] sm:$0xff]  ;;  %v130_v47 = vld [vmem:[%s1243_s2 + $0x20] sm:$0xff] }
  0x11   :  { %161 = vmatpush.msra.mxu1 %v154_v34  ;;  %610 = vmatpush.msra.mxu3 %v154_v34  ;;  %v148_v48 = vld [vmem:[%s1244_s3 + $0x30] sm:$0xff]  ;;  %v917_v49 = vld [vmem:[%s1242_s0 + $0x38] sm:$0xff]  ;;  %v925_v51 = vld [vmem:[%s1242_s0 + $0x60] sm:$0xff] }
  0x12   :  { %69 = vmatpush.msra.mxu0 %v727_v8  ;;  %599 = vmatpush.msra.mxu2 %v727_v8  ;;  %v129_v50 = vld [vmem:[%s1243_s2 + $0x18] sm:$0xff]  ;;  %v147_v52 = vld [vmem:[%s1244_s3 + $0x28] sm:$0xff]  ;;  %v128_v53 = vld [vmem:[%s1243_s2 + $0x10] sm:$0xff] }
  0x13   :  { %162 = vmatpush.msra.mxu1 %v153_v36  ;;  %611 = vmatpush.msra.mxu3 %v153_v36  ;;  %v146_v54 = vld [vmem:[%s1244_s3 + $0x20] sm:$0xff]  ;;  %v127_v55 = vld [vmem:[%s1243_s2 + $0x8] sm:$0xff]  ;;  %v950_v57 = vld [vmem:[%s1242_s0 + $0x70] sm:$0xff] }
  0x14   :  { %70 = vmatpush.msra.mxu0 %v734_v9  ;;  %600 = vmatpush.msra.mxu2 %v734_v9  ;;  %v944_v56 = vld [vmem:[%s1242_s0 + $0x68] sm:$0xff]  ;;  %v956_v58 = vld [vmem:[%s1242_s0 + $0x78] sm:$0xff]  ;;  %v126_v60 = vld [vmem:[%s1243_s2] sm:$0xff] }
  0x15   :  { %163 = vmatpush.msra.mxu1 %v152_v38  ;;  %612 = vmatpush.msra.mxu3 %v152_v38  ;;  %v145_v59 = vld [vmem:[%s1244_s3 + $0x18] sm:$0xff]  ;;  %v144_v61 = vld [vmem:[%s1244_s3 + $0x10] sm:$0xff]  ;;  %v143_v62 = vld [vmem:[%s1244_s3 + $0x8] sm:$0xff] }
  0x16   :  { %71 = vmatpush.msra.mxu0 %v741_v10  ;;  %601 = vmatpush.msra.mxu2 %v741_v10  ;;  %v142_v63 = vld [vmem:[%s1244_s3] sm:$0xff]  ;;  %v412_v28 = vld [vmem:[%s1246_s6 + $0x38] sm:$0xff]  ;;  %v410_v30 = vld [vmem:[%s1246_s6 + $0x28] sm:$0xff] }
  0x17   :  { %164 = vmatpush.msra.mxu1 %v151_v41  ;;  %613 = vmatpush.msra.mxu3 %v151_v41  ;;  %v407_v36 = vld [vmem:[%s1246_s6 + $0x10] sm:$0xff]  ;;  %v405_v38 = vld [vmem:[%s1246_s6] sm:$0xff] }
  0x18   :  { %72 = vmatpush.msra.mxu0 %v748_v11  ;;  %602 = vmatpush.msra.mxu2 %v748_v11 }
  0x19   :  { %165 = vmatpush.msra.mxu1 %v150_v44  ;;  %614 = vmatpush.msra.mxu3 %v150_v44 }
  0x1a   :  { %73 = vmatpush.msra.mxu0 %v755_v12  ;;  %603 = vmatpush.msra.mxu2 %v755_v12 }
  0x1b   :  { %166 = vmatpush.msra.mxu1 %v149_v46  ;;  %615 = vmatpush.msra.mxu3 %v149_v46 }
  0x1c   :  { %74 = vmatpush.msra.mxu0 %v762_v13  ;;  %604 = vmatpush.msra.mxu2 %v762_v13 }
  0x1d   :  { %167 = vmatpush.msra.mxu1 %v148_v48  ;;  %616 = vmatpush.msra.mxu3 %v148_v48 }
  0x1e   :  { %75 = vmatpush.msra.mxu0 %v769_v14  ;;  %605 = vmatpush.msra.mxu2 %v769_v14 }
  0x1f   :  { %168 = vmatpush.msra.mxu1 %v147_v52  ;;  %617 = vmatpush.msra.mxu3 %v147_v52 }
  0x20   :  { %76 = vmatpush.msra.mxu0 %v776_v15  ;;  %606 = vmatpush.msra.mxu2 %v776_v15 }
  0x21   :  { %77 = vmatmul.f32.vlgmr.msra.gmra.mxu0 %v782_v16  ;;  %101 = vmatmul.f32.vlgmr.msra.gmra.mxu2 %v809_v20 }
  0x22   :  { %223 = vmatpush.msrb.mxu2 %v141_v21  ;;  %169 = vmatpush.msra.mxu1 %v146_v54 }
  0x23   :  { %618 = vmatpush.msra.mxu3 %v146_v54 }
  0x24   :  { %224 = vmatpush.msrb.mxu2 %v140_v22  ;;  %170 = vmatpush.msra.mxu1 %v145_v59  ;;  %v415_v22 = vld [vmem:[%s1246_s6 + $0x50] sm:$0xff] }
  0x25   :  { %619 = vmatpush.msra.mxu3 %v145_v59 }
  0x26   :  { %225 = vmatpush.msrb.mxu2 %v139_v25  ;;  %171 = vmatpush.msra.mxu1 %v144_v61  ;;  %v414_v25 = vld [vmem:[%s1246_s6 + $0x48] sm:$0xff] }
  0x27   :  { %620 = vmatpush.msra.mxu3 %v144_v61 }
  0x28   :  { %226 = vmatpush.msrb.mxu2 %v138_v27  ;;  %172 = vmatpush.msra.mxu1 %v143_v62  ;;  %v413_v27 = vld [vmem:[%s1246_s6 + $0x40] sm:$0xff] }
  0x29   :  { %80 = vmatmul.f32.gmra.mxu0 %v791_v17  ;;  %104 = vmatmul.f32.gmra.mxu2 %v826_v24 }
  0x2a   :  { %227 = vmatpush.msrb.mxu2 %v137_v29  ;;  %621 = vmatpush.msra.mxu3 %v143_v62  ;;  %v411_v29 = vld [vmem:[%s1246_s6 + $0x30] sm:$0xff] }
  0x2b   :  { %173 = vmatpush.msra.mxu1 %v142_v63 }
  0x2c   :  { %228 = vmatpush.msrb.mxu2 %v136_v32  ;;  %174 = vmatmul.f32.vlgmr.msra.gmra.mxu1 %v776_v15  ;;  %v409_v32 = vld [vmem:[%s1246_s6 + $0x20] sm:$0xff] }
  0x2d   :  { %622 = vmatpush.msra.mxu3 %v142_v63 }
  0x2e   :  { %229 = vmatpush.msrb.mxu2 %v135_v35  ;;  %198 = vmatmul.f32.vlgmr.msra.gmra.mxu3 %v720_v7  ;;  %v408_v35 = vld [vmem:[%s1246_s6 + $0x18] sm:$0xff] }
  0x30   :  { %230 = vmatpush.msrb.mxu2 %v134_v37  ;;  %v406_v37 = vld [vmem:[%s1246_s6 + $0x8] sm:$0xff] }
  0x31   :  { %83 = vmatmul.f32.gmra.mxu0 %v797_v18  ;;  %107 = vmatmul.f32.gmra.mxu2 %v859_v33 }
  0x32   :  { %231 = vmatpush.msrb.mxu2 %v133_v39 }
  0x34   :  { %232 = vmatpush.msrb.mxu2 %v132_v43  ;;  %177 = vmatmul.f32.gmra.mxu1 %v769_v14  ;;  %v416_v14 = vld [vmem:[%s1246_s6 + $0x58] sm:$0xff] }
  0x36   :  { %233 = vmatpush.msrb.mxu2 %v131_v45  ;;  %201 = vmatmul.f32.gmra.mxu3 %v713_v6  ;;  %v1041_v45 = vld [vmem:[%s1245_s4] ss:$0 sm:$0xff] }
  0x38   :  { %234 = vmatpush.msrb.mxu2 %v130_v47 }
  0x39   :  { %86 = vmatmul.f32.gmra.mxu0 %v803_v19  ;;  %110 = vmatmul.f32.gmra.mxu2 %v892_v42 }
  0x3a   :  { %235 = vmatpush.msrb.mxu2 %v129_v50 }
  0x3c   :  { %236 = vmatpush.msrb.mxu2 %v128_v53  ;;  %180 = vmatmul.f32.gmra.mxu1 %v762_v13  ;;  %v417_v13 = vld [vmem:[%s1246_s6 + $0x60] sm:$0xff] }
  0x3e   :  { %237 = vmatpush.msrb.mxu2 %v127_v55  ;;  %204 = vmatmul.f32.gmra.mxu3 %v706_v5 }
  0x40   :  { %238 = vmatpush.msrb.mxu2 %v126_v60 }
  0x41   :  { %89 = vmatmul.f32.gmra.mxu0 %v821_v23  ;;  %113 = vmatmul.f32.gmra.mxu2 %v925_v51 }
  0x44   :  { %183 = vmatmul.f32.gmra.mxu1 %v755_v12 }
  0x46   :  { %207 = vmatmul.f32.gmra.mxu3 %v699_v4 }
  0x49   :  { %92 = vmatmul.f32.gmra.mxu0 %v851_v31  ;;  %116 = vmatmul.f32.gmra.mxu2 %v944_v56 }
  0x4c   :  { %186 = vmatmul.f32.gmra.mxu1 %v748_v11 }
  0x4e   :  { %210 = vmatmul.f32.gmra.mxu3 %v692_v3 }
  0x51   :  { %95 = vmatmul.f32.gmra.mxu0 %v884_v40  ;;  %119 = vmatmul.f32.gmra.mxu2 %v950_v57 }
  0x54   :  { %189 = vmatmul.f32.gmra.mxu1 %v741_v10 }
  0x56   :  { %213 = vmatmul.f32.gmra.mxu3 %v685_v2 }
  0x59   :  { %98 = vmatmul.f32.gmra.mxu0 %v917_v49  ;;  %122 = vmatmul.f32.gmra.mxu2 %v956_v58 }
  0x5c   :  { %192 = vmatmul.f32.gmra.mxu1 %v734_v9 }
  0x5e   :  { %216 = vmatmul.f32.gmra.mxu3 %v678_v1  ;;  %v420_v1 = vld [vmem:[%s1246_s6 + $0x78] sm:$0xff] }
  0x5f   :  { %421 = vmatpush.msrb.mxu0 %v420_v1 }
  0x64   :  { %195 = vmatmul.f32.gmra.mxu1 %v727_v8  ;;  %v418_v8 = vld [vmem:[%s1246_s6 + $0x68] sm:$0xff] }
  0x66   :  { %219 = vmatmul.f32.gmra.mxu3 %v673_v0  ;;  %v419_v0 = vld [vmem:[%s1246_s6 + $0x70] sm:$0xff] }
  0x67   :  { %422 = vmatpush.msrb.mxu0 %v419_v0 }
  0x69   :  { %423 = vmatpush.msrb.mxu0 %v418_v8 }
  0x6b   :  { %424 = vmatpush.msrb.mxu0 %v417_v13 }
  0x6d   :  { %425 = vmatpush.msrb.mxu0 %v416_v14 }
  0x6f   :  { %426 = vmatpush.msrb.mxu0 %v415_v22 }
  0x71   :  { %427 = vmatpush.msrb.mxu0 %v414_v25 }
  0x73   :  { %428 = vmatpush.msrb.mxu0 %v413_v27 }
  0x75   :  { %429 = vmatpush.msrb.mxu0 %v412_v28 }
  0x77   :  { %430 = vmatpush.msrb.mxu0 %v411_v29 }
  0x79   :  { %431 = vmatpush.msrb.mxu0 %v410_v30 }
  0x7b   :  { %432 = vmatpush.msrb.mxu0 %v409_v32 }
  0x7d   :  { %433 = vmatpush.msrb.mxu0 %v408_v35 }
  0x7f   :  { %434 = vmatpush.msrb.mxu0 %v407_v36 }
  0x81   :  { %435 = vmatpush.msrb.mxu0 %v406_v37 }
  0x83   :  { %436 = vmatpush.msrb.mxu0 %v405_v38 }
  0x9e   :  { %v78_v21 = vpop.f32.mrf.mxu0 }
  0x9f   :  { %239 = vmatmul.f32.vlgmr.msrb.gmra.mxu2 %v78_v21 }
  0xa4   :  { %v102_v10 = vpop.f32.mrf.mxu2 }
  0xa6   :  { %v81_v15 = vpop.f32.mrf.mxu0 }
  0xa7   :  { %242 = vmatmul.f32.gmra.mxu2 %v81_v15 }
  0xa9   :  { %v175_v41 = vpop.f32.mrf.mxu1 }
  0xac   :  { %v105_v2 = vpop.f32.mrf.mxu2 }
  0xae   :  { %v84_v7 = vpop.f32.mrf.mxu0 }
  0xaf   :  { %245 = vmatmul.f32.gmra.mxu2 %v84_v7 }
  0xb1   :  { %v178_v44 = vpop.f32.mrf.mxu1  ;;  %v199_v22 = vpop.f32.mrf.mxu3 }
  0xb4   :  { %v108_v9 = vpop.f32.mrf.mxu2 }
  0xb6   :  { %v87_v5 = vpop.f32.mrf.mxu0 }
  0xb7   :  { %248 = vmatmul.f32.gmra.mxu2 %v87_v5 }
  0xb9   :  { %v181_v50 = vpop.f32.mrf.mxu1  ;;  %v202_v32 = vpop.f32.mrf.mxu3 }
  0xbc   :  { %v111_v12 = vpop.f32.mrf.mxu2 }
  0xbe   :  { %v90_v4 = vpop.f32.mrf.mxu0 }
  0xbf   :  { %251 = vmatmul.f32.gmra.mxu2 %v90_v4 }
  0xc1   :  { %v184_v60 = vpop.f32.mrf.mxu1 }
  0xc4   :  { %v114_v26 = vpop.f32.mrf.mxu2 }
  0xc6   :  { %v93_v3 = vpop.f32.mrf.mxu0 }
  0xc7   :  { %254 = vmatmul.f32.gmra.mxu2 %v93_v3 }
  0xc9   :  { %v187_v7 = vpop.f32.mrf.mxu1 }
  0xcc   :  { %v117_v34 = vpop.f32.mrf.mxu2 }
  0xce   :  { %v96_v6 = vpop.f32.mrf.mxu0 }
  0xcf   :  { %257 = vmatmul.f32.gmra.mxu2 %v96_v6 }
  0xd4   :  { %v120_v39 = vpop.f32.mrf.mxu2 }
  0xd6   :  { %v99_v11 = vpop.f32.mrf.mxu0 }
  0xd7   :  { %260 = vmatmul.f32.gmra.mxu2 %v99_v11  ;;  %v190_v11 = vpop.f32.mrf.mxu1 }
  0xdc   :  { %v123_v43 = vpop.f32.mrf.mxu2 }
  0xdf   :  { %263 = vmatmul.f32.gmra.mxu2 %v102_v10 }
  0xe7   :  { %266 = vmatmul.f32.gmra.mxu2 %v105_v2 }
  0xef   :  { %269 = vmatmul.f32.gmra.mxu2 %v108_v9 }
  0xf7   :  { %272 = vmatmul.f32.gmra.mxu2 %v111_v12  ;;  %v193_v12 = vpop.f32.mrf.mxu1 }
  0xff   :  { %275 = vmatmul.f32.gmra.mxu2 %v114_v26  ;;  %v196_v28 = vpop.f32.mrf.mxu1 }
 0x107   :  { %278 = vmatmul.f32.gmra.mxu2 %v117_v34 }
 0x10f   :  { %281 = vmatmul.f32.gmra.mxu2 %v120_v39  ;;  %v205_v39 = vpop.f32.mrf.mxu3 }
 0x117   :  { %284 = vmatmul.f32.gmra.mxu2 %v123_v43 }
 0x122   :  { %v240_v46 = vpop.f32.mrf.mxu2 }
 0x123   :  { %v241_v47 = vadd.f32 %v240_v46, %v175_v41 }
 0x125   :  { %v1044_v48 = vadd.f32 %v1041_v45, %v241_v47 }
 0x127   :  { %v308_v52 = vmax.f32 %v1044_v48, 0.0  ;;  %v392_v48 = vld [vmem:[%s1247_s5 + $0x18] sm:$0xff] }
 0x129   :  { %437 = vmatmul.f32.vlgmr.msrb.gmra.mxu0 %v308_v52 }
 0x12a   :  { %v243_v53 = vpop.f32.mrf.mxu2 }
 0x12b   :  { %v244_v54 = vadd.f32 %v243_v53, %v178_v44 }
 0x12d   :  { %v1050_v55 = vadd.f32 %v1041_v45, %v244_v54 }
 0x12f   :  { %v309_v59 = vmax.f32 %v1050_v55, 0.0  ;;  %v389_v55 = vld [vmem:[%s1247_s5] sm:$0xff] }
 0x131   :  { %440 = vmatmul.f32.gmra.mxu0 %v309_v59 }
 0x132   :  { %v246_v61 = vpop.f32.mrf.mxu2 }
 0x133   :  { %v247_v62 = vadd.f32 %v246_v61, %v181_v50  ;;  %v208_v50 = vpop.f32.mrf.mxu3 }
 0x135   :  { %v1056_v63 = vadd.f32 %v1041_v45, %v247_v62 }
 0x137   :  { %v310_v21 = vmax.f32 %v1056_v63, 0.0 }
 0x139   :  { %443 = vmatmul.f32.gmra.mxu0 %v310_v21 }
 0x13a   :  { %v249_v15 = vpop.f32.mrf.mxu2 }
 0x13b   :  { %v250_v5 = vadd.f32 %v249_v15, %v184_v60  ;;  %v211_v15 = vpop.f32.mrf.mxu3 }
 0x13d   :  { %v1062_v4 = vadd.f32 %v1041_v45, %v250_v5 }
 0x13f   :  { %v311_v3 = vmax.f32 %v1062_v4, 0.0 }
 0x141   :  { %446 = vmatmul.f32.gmra.mxu0 %v311_v3 }
 0x142   :  { %v252_v6 = vpop.f32.mrf.mxu2 }
 0x143   :  { %v253_v10 = vadd.f32 %v252_v6, %v187_v7 }
 0x145   :  { %v1068_v2 = vadd.f32 %v1041_v45, %v253_v10 }
 0x147   :  { %v312_v9 = vmax.f32 %v1068_v2, 0.0 }
 0x149   :  { %449 = vmatmul.f32.gmra.mxu0 %v312_v9 }
 0x14a   :  { %v255_v1 = vpop.f32.mrf.mxu2 }
 0x14b   :  { %v256_v0 = vadd.f32 %v255_v1, %v190_v11  ;;  %v214_v1 = vpop.f32.mrf.mxu3 }
 0x14d   :  { %v1074_v8 = vadd.f32 %v1041_v45, %v256_v0 }
 0x14f   :  { %v313_v13 = vmax.f32 %v1074_v8, 0.0 }
 0x151   :  { %452 = vmatmul.f32.gmra.mxu0 %v313_v13 }
 0x152   :  { %v258_v14 = vpop.f32.mrf.mxu2 }
 0x153   :  { %v259_v25 = vadd.f32 %v258_v14, %v193_v12 }
 0x155   :  { %v1080_v26 = vadd.f32 %v1041_v45, %v259_v25 }
 0x157   :  { %v314_v27 = vmax.f32 %v1080_v26, 0.0 }
 0x159   :  { %455 = vmatmul.f32.gmra.mxu0 %v314_v27 }
 0x15a   :  { %v261_v29 = vpop.f32.mrf.mxu2 }
 0x15b   :  { %v262_v30 = vadd.f32 %v261_v29, %v196_v28  ;;  %v217_v28 = vpop.f32.mrf.mxu3 }
 0x15d   :  { %v299_v34 = vadd.f32 %v1041_v45, %v262_v30 }
 0x15f   :  { %v315_v35 = vmax.f32 %v299_v34, 0.0 }
 0x161   :  { %458 = vmatmul.f32.gmra.mxu0 %v315_v35 }
 0x162   :  { %v264_v36 = vpop.f32.mrf.mxu2 }
 0x163   :  { %v265_v37 = vadd.f32 %v264_v36, %v199_v22 }
 0x165   :  { %v300_v38 = vadd.f32 %v1041_v45, %v265_v37  ;;  %v220_v37 = vpop.f32.mrf.mxu3 }
 0x167   :  { %v316_v41 = vmax.f32 %v300_v38, 0.0 }
 0x169   :  { %461 = vmatmul.f32.gmra.mxu0 %v316_v41 }
 0x16a   :  { %v267_v43 = vpop.f32.mrf.mxu2 }
 0x16b   :  { %v268_v44 = vadd.f32 %v267_v43, %v202_v32 }
 0x16d   :  { %v301_v46 = vadd.f32 %v1041_v45, %v268_v44 }
 0x16f   :  { %v317_v47 = vmax.f32 %v301_v46, 0.0 }
 0x171   :  { %464 = vmatmul.f32.gmra.mxu0 %v317_v47 }
 0x172   :  { %v270_v53 = vpop.f32.mrf.mxu2 }
 0x173   :  { %v271_v54 = vadd.f32 %v270_v53, %v205_v39 }
 0x175   :  { %v302_v60 = vadd.f32 %v1041_v45, %v271_v54 }
 0x177   :  { %v318_v61 = vmax.f32 %v302_v60, 0.0 }
 0x179   :  { %467 = vmatmul.f32.gmra.mxu0 %v318_v61 }
 0x17a   :  { %v273_v62 = vpop.f32.mrf.mxu2 }
 0x17b   :  { %v274_v7 = vadd.f32 %v273_v62, %v208_v50  ;;  %v1175_v50 = vld [vmem:[%s1248_s7] ss:$0 sm:$0xff] }
 0x17d   :  { %v303_v5 = vadd.f32 %v1041_v45, %v274_v7 }
 0x17f   :  { %v319_v6 = vmax.f32 %v303_v5, 0.0 }
 0x181   :  { %470 = vmatmul.f32.gmra.mxu0 %v319_v6 }
 0x182   :  { %v276_v10 = vpop.f32.mrf.mxu2 }
 0x183   :  { %v277_v11 = vadd.f32 %v276_v10, %v211_v15 }
 0x185   :  { %v304_v0 = vadd.f32 %v1041_v45, %v277_v11 }
 0x187   :  { %v320_v12 = vmax.f32 %v304_v0, 0.0 }
 0x189   :  { %473 = vmatmul.f32.gmra.mxu0 %v320_v12 }
 0x18a   :  { %v279_v14 = vpop.f32.mrf.mxu2 }
 0x18b   :  { %v280_v22 = vadd.f32 %v279_v14, %v214_v1 }
 0x18d   :  { %v305_v25 = vadd.f32 %v1041_v45, %v280_v22 }
 0x18f   :  { %v321_v29 = vmax.f32 %v305_v25, 0.0 }
 0x191   :  { %476 = vmatmul.f32.gmra.mxu0 %v321_v29 }
 0x192   :  { %v282_v30 = vpop.f32.mrf.mxu2 }
 0x193   :  { %v283_v32 = vadd.f32 %v282_v30, %v217_v28 }
 0x195   :  { %v306_v34 = vadd.f32 %v1041_v45, %v283_v32 }
 0x197   :  { %v322_v36 = vmax.f32 %v306_v34, 0.0 }
 0x199   :  { %479 = vmatmul.f32.gmra.mxu0 %v322_v36 }
 0x19a   :  { %v285_v38 = vpop.f32.mrf.mxu2 }
 0x19b   :  { %v286_v39 = vadd.f32 %v285_v38, %v220_v37 }
 0x19d   :  { %v307_v43 = vadd.f32 %v1041_v45, %v286_v39  ;;  %v393_v45 = vld [vmem:[%s1247_s5 + $0x20] sm:$0xff] }
 0x19f   :  { %v323_v44 = vmax.f32 %v307_v43, 0.0 }
 0x1a1   :  { %324 = vmatpush.msrb.mxu3 %v323_v44  ;;  %482 = vmatmul.f32.gmra.mxu0 %v323_v44 }
 0x1a3   :  { %325 = vmatpush.msrb.mxu3 %v322_v36 }
 0x1a5   :  { %326 = vmatpush.msrb.mxu3 %v321_v29 }
 0x1a7   :  { %327 = vmatpush.msrb.mxu3 %v320_v12 }
 0x1a9   :  { %328 = vmatpush.msrb.mxu3 %v319_v6 }
 0x1ab   :  { %329 = vmatpush.msrb.mxu3 %v318_v61 }
 0x1ad   :  { %330 = vmatpush.msrb.mxu3 %v317_v47 }
 0x1af   :  { %331 = vmatpush.msrb.mxu3 %v316_v41 }
 0x1b1   :  { %332 = vmatpush.msrb.mxu3 %v315_v35 }
 0x1b3   :  { %333 = vmatpush.msrb.mxu3 %v314_v27 }
 0x1b5   :  { %334 = vmatpush.msrb.mxu3 %v313_v13  ;;  %v438_v13 = vpop.f32.mrf.mxu0 }
 0x1b7   :  { %335 = vmatpush.msrb.mxu3 %v312_v9 }
 0x1b9   :  { %336 = vmatpush.msrb.mxu3 %v311_v3 }
 0x1bb   :  { %337 = vmatpush.msrb.mxu3 %v310_v21 }
 0x1bd   :  { %338 = vmatpush.msrb.mxu3 %v309_v59  ;;  %v441_v35 = vpop.f32.mrf.mxu0 }
 0x1bf   :  { %339 = vmatpush.msrb.mxu3 %v308_v52  ;;  %v391_v52 = vld [vmem:[%s1247_s5 + $0x10] sm:$0xff] }
 0x1c0   :  { %340 = vmatmul.f32.vlgmr.msrb.gmra.mxu3 %v782_v16  ;;  %v404_v16 = vld [vmem:[%s1247_s5 + $0x78] sm:$0xff] }
 0x1c1   :  { %486 = vmatpush.msrb.mxu1 %v404_v16 }
 0x1c5   :  { %v444_v46 = vpop.f32.mrf.mxu0 }
 0x1c8   :  { %343 = vmatmul.f32.gmra.mxu3 %v791_v17  ;;  %v403_v17 = vld [vmem:[%s1247_s5 + $0x70] sm:$0xff] }
 0x1c9   :  { %487 = vmatpush.msrb.mxu1 %v403_v17 }
 0x1cd   :  { %v447_v53 = vpop.f32.mrf.mxu0 }
 0x1d0   :  { %346 = vmatmul.f32.gmra.mxu3 %v797_v18  ;;  %v402_v18 = vld [vmem:[%s1247_s5 + $0x68] sm:$0xff] }
 0x1d1   :  { %488 = vmatpush.msrb.mxu1 %v402_v18 }
 0x1d5   :  { %v450_v7 = vpop.f32.mrf.mxu0 }
 0x1d8   :  { %349 = vmatmul.f32.gmra.mxu3 %v803_v19  ;;  %v401_v19 = vld [vmem:[%s1247_s5 + $0x60] sm:$0xff] }
 0x1d9   :  { %489 = vmatpush.msrb.mxu1 %v401_v19 }
 0x1dd   :  { %v453_v1 = vpop.f32.mrf.mxu0 }
 0x1e0   :  { %352 = vmatmul.f32.gmra.mxu3 %v821_v23  ;;  %v399_v23 = vld [vmem:[%s1247_s5 + $0x50] sm:$0xff] }
 0x1e5   :  { %v456_v22 = vpop.f32.mrf.mxu0 }
 0x1e8   :  { %355 = vmatmul.f32.gmra.mxu3 %v851_v31  ;;  %v397_v31 = vld [vmem:[%s1247_s5 + $0x40] sm:$0xff] }
 0x1ed   :  { %v459_v30 = vpop.f32.mrf.mxu0 }
 0x1f0   :  { %358 = vmatmul.f32.gmra.mxu3 %v884_v40  ;;  %v396_v40 = vld [vmem:[%s1247_s5 + $0x38] sm:$0xff] }
 0x1f5   :  { %v462_v39 = vpop.f32.mrf.mxu0 }
 0x1f8   :  { %361 = vmatmul.f32.gmra.mxu3 %v917_v49  ;;  %v395_v49 = vld [vmem:[%s1247_s5 + $0x30] sm:$0xff] }
 0x1fd   :  { %v465_v18 = vpop.f32.mrf.mxu0 }
 0x200   :  { %364 = vmatmul.f32.gmra.mxu3 %v809_v20  ;;  %v400_v20 = vld [vmem:[%s1247_s5 + $0x58] sm:$0xff] }
 0x201   :  { %490 = vmatpush.msrb.mxu1 %v400_v20 }
 0x203   :  { %491 = vmatpush.msrb.mxu1 %v399_v23 }
 0x208   :  { %367 = vmatmul.f32.gmra.mxu3 %v826_v24  ;;  %v398_v24 = vld [vmem:[%s1247_s5 + $0x48] sm:$0xff] }
 0x209   :  { %492 = vmatpush.msrb.mxu1 %v398_v24  ;;  %v468_v24 = vpop.f32.mrf.mxu0 }
 0x20b   :  { %493 = vmatpush.msrb.mxu1 %v397_v31 }
 0x20d   :  { %494 = vmatpush.msrb.mxu1 %v396_v40 }
 0x20f   :  { %495 = vmatpush.msrb.mxu1 %v395_v49 }
 0x210   :  { %370 = vmatmul.f32.gmra.mxu3 %v859_v33  ;;  %v394_v33 = vld [vmem:[%s1247_s5 + $0x28] sm:$0xff] }
 0x211   :  { %496 = vmatpush.msrb.mxu1 %v394_v33  ;;  %v471_v33 = vpop.f32.mrf.mxu0 }
 0x213   :  { %497 = vmatpush.msrb.mxu1 %v393_v45 }
 0x215   :  { %498 = vmatpush.msrb.mxu1 %v392_v48 }
 0x217   :  { %499 = vmatpush.msrb.mxu1 %v391_v52 }
 0x218   :  { %373 = vmatmul.f32.gmra.mxu3 %v892_v42  ;;  %v390_v42 = vld [vmem:[%s1247_s5 + $0x8] sm:$0xff] }
 0x219   :  { %500 = vmatpush.msrb.mxu1 %v390_v42 }
 0x21b   :  { %501 = vmatpush.msrb.mxu1 %v389_v55 }
 0x220   :  { %376 = vmatmul.f32.gmra.mxu3 %v925_v51 }
 0x228   :  { %379 = vmatmul.f32.gmra.mxu3 %v944_v56 }
 0x230   :  { %382 = vmatmul.f32.gmra.mxu3 %v950_v57 }
 0x238   :  { %385 = vmatmul.f32.gmra.mxu3 %v956_v58 }
 0x243   :  { %v341_v59 = vpop.f32.mrf.mxu3 }
 0x244   :  { %502 = vmatmul.f32.vlgmr.msrb.gmra.mxu1 %v341_v59  ;;  %v474_v59 = vpop.f32.mrf.mxu0 }
 0x24b   :  { %v344_v63 = vpop.f32.mrf.mxu3 }
 0x24c   :  { %505 = vmatmul.f32.gmra.mxu1 %v344_v63 }
 0x253   :  { %v347_v21 = vpop.f32.mrf.mxu3 }
 0x254   :  { %508 = vmatmul.f32.gmra.mxu1 %v347_v21 }
 0x25b   :  { %v350_v4 = vpop.f32.mrf.mxu3 }
 0x25c   :  { %511 = vmatmul.f32.gmra.mxu1 %v350_v4 }
 0x263   :  { %v353_v51 = vpop.f32.mrf.mxu3 }
 0x264   :  { %514 = vmatmul.f32.gmra.mxu1 %v353_v51 }
 0x26b   :  { %v356_v3 = vpop.f32.mrf.mxu3 }
 0x26c   :  { %517 = vmatmul.f32.gmra.mxu1 %v356_v3  ;;  %v477_v3 = vpop.f32.mrf.mxu0 }
 0x273   :  { %v359_v2 = vpop.f32.mrf.mxu3 }
 0x274   :  { %520 = vmatmul.f32.gmra.mxu1 %v359_v2 }
 0x27b   :  { %v362_v9 = vpop.f32.mrf.mxu3 }
 0x27c   :  { %523 = vmatmul.f32.gmra.mxu1 %v362_v9 }
 0x283   :  { %v365_v56 = vpop.f32.mrf.mxu3 }
 0x284   :  { %526 = vmatmul.f32.gmra.mxu1 %v365_v56 }
 0x28b   :  { %v368_v57 = vpop.f32.mrf.mxu3 }
 0x28c   :  { %529 = vmatmul.f32.gmra.mxu1 %v368_v57  ;;  %v480_v57 = vpop.f32.mrf.mxu0 }
 0x293   :  { %v371_v58 = vpop.f32.mrf.mxu3 }
 0x294   :  { %532 = vmatmul.f32.gmra.mxu1 %v371_v58 }
 0x29b   :  { %v374_v8 = vpop.f32.mrf.mxu3 }
 0x29c   :  { %535 = vmatmul.f32.gmra.mxu1 %v374_v8 }
 0x2a3   :  { %v377_v26 = vpop.f32.mrf.mxu3 }
 0x2a4   :  { %538 = vmatmul.f32.gmra.mxu1 %v377_v26  ;;  %v483_v26 = vpop.f32.mrf.mxu0 }
 0x2ab   :  { %v380_v27 = vpop.f32.mrf.mxu3 }
 0x2ac   :  { %541 = vmatmul.f32.gmra.mxu1 %v380_v27 }
 0x2b3   :  { %v383_v41 = vpop.f32.mrf.mxu3 }
 0x2b4   :  { %544 = vmatmul.f32.gmra.mxu1 %v383_v41 }
 0x2bb   :  { %v386_v47 = vpop.f32.mrf.mxu3 }
 0x2bc   :  { %547 = vmatmul.f32.gmra.mxu1 %v386_v47 }
 0x2c1   :  { %v503_v54 = vpop.f32.mrf.mxu1 }
 0x2c2   :  { %v504_v60 = vadd.f32 %v503_v54, %v438_v13 }
 0x2c4   :  { %v555_v61 = vadd.f32 %v1175_v50, %v504_v60 }
 0x2c6   :  { %571 = vst [vmem:[%s1249_s8] sm:$0xff] %v555_v61 }
 0x2c9   :  { %v506_v62 = vpop.f32.mrf.mxu1 }
 0x2ca   :  { %v507_v15 = vadd.f32 %v506_v62, %v441_v35 }
 0x2cc   :  { %v556_v5 = vadd.f32 %v1175_v50, %v507_v15 }
 0x2ce   :  { %572 = vst [vmem:[%s1249_s8 + $0x8] sm:$0xff] %v556_v5 }
 0x2d1   :  { %v509_v6 = vpop.f32.mrf.mxu1 }
 0x2d2   :  { %v510_v10 = vadd.f32 %v509_v6, %v444_v46 }
 0x2d4   :  { %v557_v11 = vadd.f32 %v1175_v50, %v510_v10 }
 0x2d6   :  { %573 = vst [vmem:[%s1249_s8 + $0x10] sm:$0xff] %v557_v11 }
 0x2d9   :  { %v512_v0 = vpop.f32.mrf.mxu1 }
 0x2da   :  { %v513_v12 = vadd.f32 %v512_v0, %v447_v53 }
 0x2dc   :  { %v558_v14 = vadd.f32 %v1175_v50, %v513_v12 }
 0x2de   :  { %574 = vst [vmem:[%s1249_s8 + $0x18] sm:$0xff] %v558_v14 }
 0x2e1   :  { %v515_v25 = vpop.f32.mrf.mxu1 }
 0x2e2   :  { %v516_v28 = vadd.f32 %v515_v25, %v450_v7 }
 0x2e4   :  { %v559_v29 = vadd.f32 %v1175_v50, %v516_v28 }
 0x2e6   :  { %575 = vst [vmem:[%s1249_s8 + $0x20] sm:$0xff] %v559_v29 }
 0x2e9   :  { %v518_v32 = vpop.f32.mrf.mxu1 }
 0x2ea   :  { %v519_v34 = vadd.f32 %v518_v32, %v453_v1 }
 0x2ec   :  { %v560_v36 = vadd.f32 %v1175_v50, %v519_v34 }
 0x2ee   :  { %576 = vst [vmem:[%s1249_s8 + $0x28] sm:$0xff] %v560_v36 }
 0x2f1   :  { %v521_v37 = vpop.f32.mrf.mxu1 }
 0x2f2   :  { %v522_v38 = vadd.f32 %v521_v37, %v456_v22 }
 0x2f4   :  { %v561_v43 = vadd.f32 %v1175_v50, %v522_v38 }
 0x2f6   :  { %577 = vst [vmem:[%s1249_s8 + $0x30] sm:$0xff] %v561_v43 }
 0x2f9   :  { %v524_v44 = vpop.f32.mrf.mxu1 }
 0x2fa   :  { %v525_v16 = vadd.f32 %v524_v44, %v459_v30 }
 0x2fc   :  { %v562_v17 = vadd.f32 %v1175_v50, %v525_v16 }
 0x2fe   :  { %578 = vst [vmem:[%s1249_s8 + $0x38] sm:$0xff] %v562_v17 }
 0x301   :  { %v527_v19 = vpop.f32.mrf.mxu1 }
 0x302   :  { %v528_v20 = vadd.f32 %v527_v19, %v462_v39 }
 0x304   :  { %v563_v23 = vadd.f32 %v1175_v50, %v528_v20 }
 0x306   :  { %579 = vst [vmem:[%s1249_s8 + $0x40] sm:$0xff] %v563_v23 }
 0x309   :  { %v530_v31 = vpop.f32.mrf.mxu1 }
 0x30a   :  { %v531_v40 = vadd.f32 %v530_v31, %v465_v18 }
 0x30c   :  { %v564_v49 = vadd.f32 %v1175_v50, %v531_v40 }
 0x30e   :  { %580 = vst [vmem:[%s1249_s8 + $0x48] sm:$0xff] %v564_v49 }
 0x311   :  { %v533_v45 = vpop.f32.mrf.mxu1 }
 0x312   :  { %v534_v48 = vadd.f32 %v533_v45, %v468_v24 }
 0x314   :  { %v565_v52 = vadd.f32 %v1175_v50, %v534_v48 }
 0x316   :  { %581 = vst [vmem:[%s1249_s8 + $0x50] sm:$0xff] %v565_v52 }
 0x319   :  { %v536_v42 = vpop.f32.mrf.mxu1 }
 0x31a   :  { %v537_v55 = vadd.f32 %v536_v42, %v471_v33 }
 0x31c   :  { %v566_v63 = vadd.f32 %v1175_v50, %v537_v55 }
 0x31e   :  { %582 = vst [vmem:[%s1249_s8 + $0x58] sm:$0xff] %v566_v63 }
 0x321   :  { %v539_v21 = vpop.f32.mrf.mxu1 }
 0x322   :  { %v540_v4 = vadd.f32 %v539_v21, %v474_v59 }
 0x324   :  { %v567_v51 = vadd.f32 %v1175_v50, %v540_v4 }
 0x326   :  { %583 = vst [vmem:[%s1249_s8 + $0x60] sm:$0xff] %v567_v51 }
 0x329   :  { %v542_v2 = vpop.f32.mrf.mxu1 }
 0x32a   :  { %v543_v9 = vadd.f32 %v542_v2, %v477_v3 }
 0x32c   :  { %v568_v56 = vadd.f32 %v1175_v50, %v543_v9 }
 0x32e   :  { %584 = vst [vmem:[%s1249_s8 + $0x68] sm:$0xff] %v568_v56 }
 0x331   :  { %v545_v58 = vpop.f32.mrf.mxu1 }
 0x332   :  { %v546_v8 = vadd.f32 %v545_v58, %v480_v57 }
 0x334   :  { %v569_v13 = vadd.f32 %v1175_v50, %v546_v8 }
 0x336   :  { %585 = vst [vmem:[%s1249_s8 + $0x70] sm:$0xff] %v569_v13 }
 0x339   :  { %v548_v27 = vpop.f32.mrf.mxu1 }
 0x33a   :  { %v549_v35 = vadd.f32 %v548_v27, %v483_v26 }
 0x33c   :  { %v570_v41 = vadd.f32 %v1175_v50, %v549_v35 }
 0x33e   :  { %586 = vst [vmem:[%s1249_s8 + $0x78] sm:$0xff] %v570_v41 }

</bundles_post_ra>
